<compile_context>
chip_gen: v7x
topology: tpu7x:2x2x1
jax: 0.10.0
libtpu: 0.0.40
codegen_flags: <defaults>
</compile_context>

<pallas_src>
import functools

import jax
import jax.numpy as jnp
import numpy as np
from jax.experimental import pallas as pl
from jax.experimental.pallas import tpu as pltpu


def _change_sim_kernel(x1_ref, x2_ref, chg_ref, out_ref, acc_ref, *,
                       hw, tile_p, pg, needs_mask, upcast_inputs):
    # x1_ref/x2_ref: (1, C, TILE_P) logits; chg_ref: (1, 1, TILE_P) int8;
    # out_ref: (1, 1, 8, 128) per-(batch, split-group) sum block (written once
    # per group); acc_ref: (1, 1) f32 running sum resident across pixel steps.
    pi = pl.program_id(2)

    @pl.when(pi == 0)
    def _():
        acc_ref[...] = jnp.zeros_like(acc_ref)

    x1 = x1_ref[0]
    x2 = x2_ref[0]
    if upcast_inputs:
        x1 = x1.astype(jnp.float32)
        x2 = x2.astype(jnp.float32)
    # else: bf16 inputs stay bf16 through max-subtract/exp (v6e/v7x bf16 EUP);
    # the class reductions below still accumulate in f32.
    # TODO(synk): gate the bf16 exp path off on v5e (no bf16 VPU/EUP there).

    # Stable exp over the class (sublane) axis; the softmax normalizer is a
    # positive per-pixel scalar and cancels in the cosine similarity.
    e1 = jnp.exp(x1 - jnp.max(x1, axis=0, keepdims=True))     # (C, TILE_P)
    e2 = jnp.exp(x2 - jnp.max(x2, axis=0, keepdims=True))     # (C, TILE_P)

    dot = jnp.sum((e1 * e2).astype(jnp.float32), axis=0, keepdims=True)
    n1 = jnp.sum((e1 * e1).astype(jnp.float32), axis=0, keepdims=True)
    n2 = jnp.sum((e2 * e2).astype(jnp.float32), axis=0, keepdims=True)

    # After exp(x - max) the max element is exactly 1 so n1, n2 >= 1: torch's
    # 1e-8 clamp is dead and rsqrt is safe (and keeps the divide off the VPU).
    cos = dot * jax.lax.rsqrt(n1 * n2)                        # (1, TILE_P)

    chg = chg_ref[0].astype(jnp.int32)                        # (1, TILE_P)
    # target = +1 where unchanged (label_change == 0) -> loss = 1 - cos
    # target = -1 where changed                       -> loss = max(cos, 0)
    loss = jnp.where(chg == 0, 1.0 - cos, jnp.maximum(cos, 0.0))

    if needs_mask:
        # Ragged / overhang pixel tiles: mask out-of-range lanes with a SELECT
        # (never a multiply) so NaN/Inf computed from stale lanes of a partial
        # DMA block cannot leak into the sum.
        gi = pl.program_id(1)
        start = (gi * pg + pi) * tile_p
        pix = start + jax.lax.broadcasted_iota(jnp.int32, (1, tile_p), 1)
        loss = jnp.where(pix < hw, loss, 0.0)

    acc_ref[...] += jnp.sum(loss, keepdims=True)              # (1, 1)

    @pl.when(pi == pl.num_programs(2) - 1)
    def _():
        out_ref[...] = jnp.broadcast_to(acc_ref[...], out_ref.shape)


def _pick_tile(hw, c, itemsize, vmem_budget_bytes):
    # Per-pixel VMEM footprint: double-buffered x1/x2 + int8 label blocks,
    # plus ~8 class-sized f32 temporaries and a handful of lane vectors.
    per_pixel = 4 * c * itemsize + 2 + (8 * c + 16) * 4
    cap = max(128, (vmem_budget_bytes // per_pixel) // 128 * 128)
    cap = min(cap, 64 * 1024)   # ~1-4 MiB of input per grid step at small C
    if hw <= cap:
        return hw               # full spatial extent in one block (always legal)
    return cap                  # multiple of 128; ragged tail masked in-kernel


def change_similarity_loss(x1, x2, label_change):
    """Equivalent of ChangeSimilarity(reduction='mean').forward(x1, x2, label_change)."""
    # TODO(synk): only reduction='mean' (the module default) is implemented.
    assert x1.shape == x2.shape
    n, c, h, w = x1.shape
    hw = h * w

    # Free reshapes only: no NCHW->NHWC transpose, no HBM pad copy.
    x1r = x1.reshape(n, c, hw)
    x2r = x2.reshape(n, c, hw)
    chg = label_change.reshape(n, 1, hw).astype(jnp.int8)     # 1 byte / pixel

    # Generation-aware VMEM budget (~48 MiB on v7x, ~96 MiB on v5e/v6e).
    try:
        vmem_cap = int(pltpu.get_tpu_info().vmem_capacity_bytes)
    except Exception:
        vmem_cap = 64 * 1024 * 1024                           # v7x-safe fallback
    vmem_budget = int(0.75 * vmem_cap)

    itemsize = jnp.dtype(x1.dtype).itemsize
    tile_p = _pick_tile(hw, c, itemsize, vmem_budget)
    grid_p = pl.cdiv(hw, tile_p)

    # v7x has two TensorCores: when N == 1 keep a parallel axis of extent 2 by
    # splitting the pixel-tile range into two groups.
    if n == 1 and grid_p == 1 and hw > 128:
        tile_p = ((hw + 255) // 256) * 128     # ~half the pixels, 128-aligned
        grid_p = pl.cdiv(hw, tile_p)
    split = 2 if (n == 1 and grid_p >= 2) else 1
    pg = pl.cdiv(grid_p, split)
    needs_mask = (split * pg * tile_p != hw)

    upcast_inputs = x1.dtype != jnp.bfloat16

    if split == 1:
        def blk_map(ni, gi, pi):
            return (ni, 0, pi)
    else:
        def blk_map(ni, gi, pi):
            # Clamp overhang tiles of the second group onto the last real
            # block; their lanes are fully masked inside the kernel.
            return (ni, 0, jnp.minimum(gi * pg + pi, grid_p - 1))

    out = pl.pallas_call(
        functools.partial(_change_sim_kernel, hw=hw, tile_p=tile_p, pg=pg,
                          needs_mask=needs_mask, upcast_inputs=upcast_inputs),
        out_shape=jax.ShapeDtypeStruct((n, split, 8, 128), jnp.float32),
        grid_spec=pltpu.PrefetchScalarGridSpec(
            num_scalar_prefetch=0,
            grid=(n, split, pg),
            in_specs=[
                pl.BlockSpec((1, c, tile_p), blk_map),
                pl.BlockSpec((1, c, tile_p), blk_map),
                pl.BlockSpec((1, 1, tile_p), blk_map),
            ],
            out_specs=pl.BlockSpec((1, 1, 8, 128),
                                   lambda ni, gi, pi: (ni, gi, 0, 0)),
            scratch_shapes=[pltpu.VMEM((1, 1), jnp.float32)],
        ),
        compiler_params=pltpu.CompilerParams(
            dimension_semantics=("parallel", "parallel", "arbitrary"),
            vmem_limit_bytes=vmem_budget),
    )(x1r, x2r, chg)

    partial = out[:, :, 0, 0]                                 # (n, split)
    return jnp.sum(partial) / jnp.float32(n * hw)


def _reference(x1, x2, label_change):
    n, c, h, w = x1.shape
    p1 = jax.nn.softmax(x1.astype(jnp.float32), axis=1)
    p2 = jax.nn.softmax(x2.astype(jnp.float32), axis=1)
    a = jnp.transpose(p1, (0, 2, 3, 1)).reshape(-1, c)
    b = jnp.transpose(p2, (0, 2, 3, 1)).reshape(-1, c)
    dot = jnp.sum(a * b, axis=-1)
    na = jnp.sqrt(jnp.sum(a * a, axis=-1))
    nb = jnp.sqrt(jnp.sum(b * b, axis=-1))
    cos = dot / jnp.maximum(na * nb, 1e-8)
    changed = label_change.reshape(-1) != 0
    loss = jnp.where(changed, jnp.maximum(cos, 0.0), 1.0 - cos)
    return jnp.mean(loss)


if __name__ == "__main__":
    key = jax.random.PRNGKey(0)
    k1, k2, k3 = jax.random.split(key, 3)

    N, C, H, W = 2, 4, 16, 16
    x1 = jax.random.normal(k1, (N, C, H, W), dtype=jnp.float32)
    x2 = jax.random.normal(k2, (N, C, H, W), dtype=jnp.float32)
    label_change = jax.random.bernoulli(k3, 0.3, (N, H, W)).astype(jnp.int32)

    loss = change_similarity_loss(x1, x2, label_change)
    loss = jax.block_until_ready(loss)

    ref = _reference(x1, x2, label_change)
    np.testing.assert_allclose(np.asarray(loss), np.asarray(ref),
                               rtol=1e-5, atol=1e-5)
    print("KERNEL_OK")
</pallas_src>

<mosaic_0001>
module attributes {stable_mosaic.version = 11 : i64} {
  func.func @_change_sim_kernel(%arg0: i32, %arg1: i32, %arg2: i32, %arg3: memref<1x4x256xf32, #tpu.memory_space<vmem>>, %arg4: memref<1x4x256xf32, #tpu.memory_space<vmem>>, %arg5: memref<1x1x256xi8, #tpu.memory_space<vmem>>, %arg6: memref<1x1x8x128xf32, #tpu.memory_space<vmem>>, %arg7: memref<1x1xf32, #tpu.memory_space<vmem>>) attributes {dimension_semantics = [#tpu.dimension_semantics<parallel>, #tpu.dimension_semantics<parallel>, #tpu.dimension_semantics<arbitrary>], iteration_bounds = array<i64: 2, 1, 1>, scalar_prefetch = 0 : i64, scratch_operands = 1 : i64, tpu.core_type = #tpu.core_type<tc>, window_params = [{transform_indices = @transform_0, window_bounds = array<i64: 1, 4, 256>}, {transform_indices = @transform_1, window_bounds = array<i64: 1, 4, 256>}, {transform_indices = @transform_2, window_bounds = array<i64: 1, 1, 256>}, {transform_indices = @transform_3, window_bounds = array<i64: 1, 1, 8, 128>}]} {
    %c0_i32 = arith.constant 0 : i32
    %0 = arith.cmpi eq, %arg2, %c0_i32 : i32
    %1 = arith.extui %0 : i1 to i32
    %c0_i32_0 = arith.constant 0 : i32
    %2 = arith.cmpi ne, %1, %c0_i32_0 : i32
    scf.if %2 {
      %cst_23 = arith.constant 0.000000e+00 : f32
      %50 = vector.broadcast %cst_23 : f32 to vector<1x1xf32>
      %c0_24 = arith.constant 0 : index
      %c0_25 = arith.constant 0 : index
      %51 = vector.load %arg7[%c0_24, %c0_25] : memref<1x1xf32, #tpu.memory_space<vmem>>, vector<1x1xf32>
      tpu.vector_store %arg7[%c0_24, %c0_25], %50 {strides = array<i32>} : memref<1x1xf32, #tpu.memory_space<vmem>>, vector<1x1xf32>,
    } else {
    }
    %c0 = arith.constant 0 : index
    %c0_1 = arith.constant 0 : index
    %c0_2 = arith.constant 0 : index
    %3 = vector.load %arg3[%c0, %c0_1, %c0_2] : memref<1x4x256xf32, #tpu.memory_space<vmem>>, vector<1x4x256xf32>
    %4 = vector.shape_cast %3 : vector<1x4x256xf32> to vector<4x256xf32>
    %c0_3 = arith.constant 0 : index
    %c0_4 = arith.constant 0 : index
    %c0_5 = arith.constant 0 : index
    %5 = vector.load %arg4[%c0_3, %c0_4, %c0_5] : memref<1x4x256xf32, #tpu.memory_space<vmem>>, vector<1x4x256xf32>
    %6 = vector.shape_cast %5 : vector<1x4x256xf32> to vector<4x256xf32>
    %cst = arith.constant dense<0xFF800000> : vector<256xf32>
    %7 = vector.multi_reduction <maximumf>, %4, %cst [0] : vector<4x256xf32> to vector<256xf32>
    %8 = vector.shape_cast %7 : vector<256xf32> to vector<1x256xf32>
    %9 = vector.broadcast %8 : vector<1x256xf32> to vector<4x256xf32>
    %10 = arith.subf %4, %9 : vector<4x256xf32>
    %11 = math.exp %10 : vector<4x256xf32>
    %cst_6 = arith.constant dense<0xFF800000> : vector<256xf32>
    %12 = vector.multi_reduction <maximumf>, %6, %cst_6 [0] : vector<4x256xf32> to vector<256xf32>
    %13 = vector.shape_cast %12 : vector<256xf32> to vector<1x256xf32>
    %14 = vector.broadcast %13 : vector<1x256xf32> to vector<4x256xf32>
    %15 = arith.subf %6, %14 : vector<4x256xf32>
    %16 = math.exp %15 : vector<4x256xf32>
    %17 = arith.mulf %11, %16 : vector<4x256xf32>
    %cst_7 = arith.constant dense<0.000000e+00> : vector<256xf32>
    %18 = vector.multi_reduction <add>, %17, %cst_7 [0] : vector<4x256xf32> to vector<256xf32>
    %19 = vector.shape_cast %18 : vector<256xf32> to vector<1x256xf32>
    %20 = arith.mulf %11, %11 : vector<4x256xf32>
    %cst_8 = arith.constant dense<0.000000e+00> : vector<256xf32>
    %21 = vector.multi_reduction <add>, %20, %cst_8 [0] : vector<4x256xf32> to vector<256xf32>
    %22 = vector.shape_cast %21 : vector<256xf32> to vector<1x256xf32>
    %23 = arith.mulf %16, %16 : vector<4x256xf32>
    %cst_9 = arith.constant dense<0.000000e+00> : vector<256xf32>
    %24 = vector.multi_reduction <add>, %23, %cst_9 [0] : vector<4x256xf32> to vector<256xf32>
    %25 = vector.shape_cast %24 : vector<256xf32> to vector<1x256xf32>
    %26 = arith.mulf %22, %25 : vector<1x256xf32>
    %27 = math.rsqrt %26 : vector<1x256xf32>
    %28 = arith.mulf %19, %27 : vector<1x256xf32>
    %c0_10 = arith.constant 0 : index
    %c0_11 = arith.constant 0 : index
    %c0_12 = arith.constant 0 : index
    %29 = vector.load %arg5[%c0_10, %c0_11, %c0_12] : memref<1x1x256xi8, #tpu.memory_space<vmem>>, vector<1x1x256xi8>
    %30 = vector.shape_cast %29 : vector<1x1x256xi8> to vector<1x256xi8>
    %31 = arith.extsi %30 : vector<1x256xi8> to vector<1x256xi32>
    %c0_i32_13 = arith.constant 0 : i32
    %32 = vector.broadcast %c0_i32_13 : i32 to vector<1x256xi32>
    %33 = arith.cmpi eq, %31, %32 : vector<1x256xi32>
    %cst_14 = arith.constant 1.000000e+00 : f32
    %34 = vector.broadcast %cst_14 : f32 to vector<1x256xf32>
    %35 = arith.subf %34, %28 : vector<1x256xf32>
    %cst_15 = arith.constant 0.000000e+00 : f32
    %36 = vector.broadcast %cst_15 : f32 to vector<1x256xf32>
    %37 = arith.maximumf %28, %36 : vector<1x256xf32>
    %38 = arith.select %33, %35, %37 : vector<1x256xi1>, vector<1x256xf32>
    %c0_16 = arith.constant 0 : index
    %c0_17 = arith.constant 0 : index
    %39 = vector.load %arg7[%c0_16, %c0_17] : memref<1x1xf32, #tpu.memory_space<vmem>>, vector<1x1xf32>
    %40 = vector.shape_cast %38 : vector<1x256xf32> to vector<1x1x256xf32>
    %cst_18 = arith.constant dense<0.000000e+00> : vector<1xf32>
    %41 = vector.multi_reduction <add>, %40, %cst_18 [1, 2] : vector<1x1x256xf32> to vector<1xf32>
    %42 = vector.shape_cast %41 : vector<1xf32> to vector<1x1x1xf32>
    %43 = vector.extract %42[0, 0, 0] : f32 from vector<1x1x1xf32>
    %44 = vector.broadcast %43 : f32 to vector<1x1xf32>
    %45 = arith.addf %39, %44 : vector<1x1xf32>
    %c0_19 = arith.constant 0 : index
    %c0_20 = arith.constant 0 : index
    %46 = vector.load %arg7[%c0_19, %c0_20] : memref<1x1xf32, #tpu.memory_space<vmem>>, vector<1x1xf32>
    tpu.vector_store %arg7[%c0_19, %c0_20], %45 {strides = array<i32>} : memref<1x1xf32, #tpu.memory_space<vmem>>, vector<1x1xf32>,
    %c0_i32_21 = arith.constant 0 : i32
    %47 = arith.cmpi eq, %arg2, %c0_i32_21 : i32
    %48 = arith.extui %47 : i1 to i32
    %c0_i32_22 = arith.constant 0 : i32
    %49 = arith.cmpi ne, %48, %c0_i32_22 : i32
    scf.if %49 {
      %c0_23 = arith.constant 0 : index
      %c0_24 = arith.constant 0 : index
      %50 = vector.load %arg7[%c0_23, %c0_24] : memref<1x1xf32, #tpu.memory_space<vmem>>, vector<1x1xf32>
      %51 = vector.shape_cast %50 : vector<1x1xf32> to vector<1x1x1x1xf32>
      %52 = vector.broadcast %51 : vector<1x1x1x1xf32> to vector<1x1x8x128xf32>
      %c0_25 = arith.constant 0 : index
      %c0_26 = arith.constant 0 : index
      %c0_27 = arith.constant 0 : index
      %c0_28 = arith.constant 0 : index
      %53 = vector.load %arg6[%c0_25, %c0_26, %c0_27, %c0_28] : memref<1x1x8x128xf32, #tpu.memory_space<vmem>>, vector<1x1x8x128xf32>
      tpu.vector_store %arg6[%c0_25, %c0_26, %c0_27, %c0_28], %52 {strides = array<i32>} : memref<1x1x8x128xf32, #tpu.memory_space<vmem>>, vector<1x1x8x128xf32>,
    } else {
    }
    return
  }
  func.func @transform_0(%arg0: i32, %arg1: i32, %arg2: i32) -> (i32, i32, i32) {
    %c0_i32 = arith.constant 0 : i32
    %c0_i32_0 = arith.constant 0 : i32
    return %arg0, %c0_i32, %arg2 : i32, i32, i32
  }
  func.func @transform_1(%arg0: i32, %arg1: i32, %arg2: i32) -> (i32, i32, i32) {
    %c0_i32 = arith.constant 0 : i32
    %c0_i32_0 = arith.constant 0 : i32
    return %arg0, %c0_i32, %arg2 : i32, i32, i32
  }
  func.func @transform_2(%arg0: i32, %arg1: i32, %arg2: i32) -> (i32, i32, i32) {
    %c0_i32 = arith.constant 0 : i32
    %c0_i32_0 = arith.constant 0 : i32
    return %arg0, %c0_i32, %arg2 : i32, i32, i32
  }
  func.func @transform_3(%arg0: i32, %arg1: i32, %arg2: i32) -> (i32, i32, i32, i32) {
    %c0_i32 = arith.constant 0 : i32
    %c0_i32_0 = arith.constant 0 : i32
    %c0_i32_1 = arith.constant 0 : i32
    return %arg0, %arg1, %c0_i32, %c0_i32_0 : i32, i32, i32, i32
  }
}

</mosaic_0001>

<bundles_post_ra>
// kernel: tpu_custom_call.1
= control target key start
LH: loop header
LB: loop body
LE: loop exit
PB: predicated region body
PF: predicated region fallthrough
CT: control target
= control target key end

     0   :  { %8 = vsyncpa [#allocation4], 0  ;;  %s1125_s0 = inlined_call_operand.hbm [shape: f32[2,4,256], index: 0, kind: input, shape index: {}]   ;;  %s1126_s1 = inlined_call_operand.hbm [shape: f32[2,4,256], index: 1, kind: input, shape index: {}]   ;;  %s1127_s2 = inlined_call_operand.vmem [shape: s8[2,1,256], index: 2, kind: input, shape index: {}]   ;;  %s1128_s3 = inlined_call_operand.hbm [shape: f32[2,1,8,128], index: 3, kind: output, shape index: {}]  }
   0x1   :  { %10 = vsyncpa [#allocation4 + $0x1], 0 }
   0x2   :  { %11 = vsyncpa [#allocation7], 0 }
   0x3   :  { %13 = vsyncpa [#allocation7 + $0x1], 0 }
   0x4   :  { %14 = vsyncpa [#allocation5], 0 }
   0x5   :  { %16 = vsyncpa [#allocation5 + $0x1], 0  ;;  %s883_s12 = smov 0   ;;  %s885_s13 = smov 0  }
   0x6   :  { %s887_s14 = smov 0   ;;  %s889_s15 = smov 0  }
   0x7   :  { %s891_s16 = smov 0   ;;  %s893_s17 = smov 0  }
   0x8 LB: > { %s606_s18 = sadd.s32 4294967295, %s856_s17   ;;  %s607_s19 = sadd.s32 4294967294, %s856_s17   ;;  %s856_s17 = sphi %s893_s17, %s22_s17   ;;  %s852_s16 = sphi %s891_s16, %s1148_s16   ;;  %s848_s15 = sphi %s889_s15, %s1147_s15   ;;  %s844_s14 = sphi %s887_s14, %s1146_s14   ;;  %s840_s13 = sphi %s885_s13, %s1145_s13   ;;  %s836_s12 = sphi %s883_s12, %s1144_s12  }
   0x9   : > { %s41_s20 = sadd.s32 1, %s852_s16  ;;  %s50_s21 = sadd.s32 1, %s844_s14 }
   0xa   : > { %p43_p0 = scmp.ge.s32.totalorder %s41_s20, 2  ;;  %p57_p1 = scmp.ne.s32.totalorder %s844_s14, %s840_s13 }
   0xb   : > { %p58_p2 = scmp.eq.s32.totalorder %s856_s17, 0  ;;  %p63_p3 = scmp.ne.s32.totalorder %s840_s13, %s836_s12 }
   0xc   : > { %s1150_s20 = smov (%p43_p0, %s41_s20), 0  ;;  %p64_p5 = scmp.eq.s32.totalorder %s606_s18, 0 }
   0xd   : > { %p924_p4 = por %p58_p2, %p57_p1  ;;  %s45_s23 = ssub.s32 %s852_s16, %s1150_s20 }
   0xe   : > { %p145_p6 = scmp.eq.s32.totalorder %s606_s18, 1  ;;  %p48_p7 = scmp.eq.s32.totalorder %s45_s23, 0 }
   0xf   : > { %p930_p8 = por %p64_p5, %p63_p3  ;;  %p151_p10 = scmp.eq.s32.totalorder %s607_s19, 1 }
  0x10   : > { %p934_p9 = por %p145_p6, %p57_p1  ;;  %p647_p13 = scmp.lt.s32.totalorder %s856_s17, 2 }
  0x11   : > { %s1132_s24 = scalar_select %p930_p8, 1, 0 }
  0x12   : > { %s1133_s25 = scalar_select %p934_p9, 1, 0 }
  0x13   : > { %s939_s26 = scalar_select %p48_p7, %s844_s14, %s50_s21  }
  0x14   : > { %p941_p11 = por %p151_p10, %p63_p3  ;;  %s948_s28 = sand.u32 1, %s844_s14  }
  0x15   : > { %s610_s29 = sshll.u32 %s948_s28, 3  ;;  %s626_s30 = sshll.u32 %s852_s16, 7 }
  0x16   : > { %s1134_s27 = scalar_select %p941_p11, 1, 0 }
  0x17   : > { %s957_s6 = scalar_lea.hbm %s1125_s0, %s626_s30  ;;  %s175_s7 = scalar_lea.vmem [#allocation3], %s610_s29 }
  0x18   : > { %s185_s8 = sshll.u32 %s175_s7, 4  ;;  %p965_p0 = pnand %p647_p13, %p924_p4  ;;  %s961_s8 = int_to_ptr.vmem [resolvable:$true] %s185_s8 }
  0x19   : > { %s172_s10 = scalar_lea.sflag [#allocation4], %s948_s28  ;;  %s710_s11 = scalar_lea.hbm %s957_s6, 128 }
  0x1a   : > { %p711_p3 = scmp.ne.s32.totalorder %s957_s6, %s710_s11  ;;  %p712_p5 = pneg %p965_p0 }
  0x1b   : > { %s715_s21 = scalar_lea.hbm %s1125_s0, 256  ;;  %p716_p4 = scmp.lt.u32.totalorder %s957_s6, %s1125_s0 }
  0x1c   : > { %p713_p6 = pnand %p712_p5, %p711_p3  ;;  %p717_p10 = scmp.lt.u32.totalorder %s715_s21, %s710_s11 }
  0x1d   : > { %p719_p12 = scmp.lt.u32.totalorder %s710_s11, %s957_s6 }
  0x1e   : > { %p714_p7 = pneg %p713_p6  ;;  %p718_p13 = por %p717_p10, %p716_p4 }
  0x20   : > { %p720_p1 = por %p719_p12, %p718_p13 }
  0x22   : > { %p721_p2 = pnand %p720_p1, %p714_p7 }
  0x24   : > { %724 = shalt.err (!%p721_p2)
}
  0x25   : > { %s725_s4 = scalar_lea.vmem %s961_s8, 128  ;;  %s858_s5 = smov [#allocation3]  }
  0x26   : > { %p726_p3 = scmp.ne.s32.totalorder %s961_s8, %s725_s4  ;;  %s730_s7 = sshll.u32 %s858_s5, 4  ;;  %s731_s7 = int_to_ptr.vmem [resolvable:$false] %s730_s7 }
  0x27   : > { %s732_s18 = scalar_lea.vmem %s731_s7, 256  ;;  %p733_p9 = scmp.lt.s32.totalorder %s961_s8, %s731_s7 }
  0x28   : > { %p728_p6 = pnand %p726_p3, %p712_p5  ;;  %p734_p4 = scmp.lt.s32.totalorder %s732_s18, %s725_s4 }
  0x2a   : > { %p729_p11 = pneg %p728_p6  ;;  %p735_p10 = por %p734_p4, %p733_p9 }
  0x2c   : > { %p736_p12 = pnand %p735_p10, %p729_p11 }
  0x2e   : > { %739 = shalt.err (!%p736_p12)
}
  0x2f   : > { %639 = dma.hbm_to_vmem [thread:$0]  (!%p965_p0), %s957_s6, 128, %s961_s8, %s172_s10  }
  0x30   : > { %p1136_p1 = scmp.lt.s32.totalorder %s856_s17, 3  ;;  %p1137_p2 = scmp.ge.s32.totalorder %s856_s17, 1 }
  0x31   : > { %s1010_s22 = scalar_lea.hbm %s1126_s1, %s626_s30  ;;  %s196_s23 = scalar_lea.vmem [#allocation6], %s610_s29 }
  0x32   : > { %p1001_p7 = pnand %p1137_p2, %p1136_p1  ;;  %s206_s4 = sshll.u32 %s196_s23, 4  ;;  %s207_s4 = int_to_ptr.vmem [resolvable:$true] %s206_s4 }
  0x33   : > { %s193_s6 = scalar_lea.sflag [#allocation7], %s948_s28  ;;  %s740_s8 = scalar_lea.hbm %s1010_s22, 128 }
  0x34   : > { %s1138_s11 = scalar_select %p1001_p7, 1, 0 }
  0x35   : > { %p741_p9 = scmp.ne.s32.totalorder %s1010_s22, %s740_s8  ;;  %s745_s30 = scalar_lea.hbm %s1126_s1, 256 }
  0x36   : > { %p746_p3 = scmp.lt.u32.totalorder %s1010_s22, %s1126_s1  ;;  %p747_p6 = scmp.lt.u32.totalorder %s745_s30, %s740_s8 }
  0x37   : > { %p743_p11 = pnand %p741_p9, %p712_p5  ;;  %p749_p10 = scmp.lt.u32.totalorder %s740_s8, %s1010_s22 }
  0x38   : > { %p748_p4 = por %p747_p6, %p746_p3 }
  0x39   : > { %p744_p13 = pneg %p743_p11 }
  0x3a   : > { %p750_p12 = por %p749_p10, %p748_p4 }
  0x3c   : > { %p751_p1 = pnand %p750_p12, %p744_p13 }
  0x3e   : > { %754 = shalt.err (!%p751_p1)
}
  0x3f   : > { %s755_s28 = scalar_lea.vmem %s207_s4, 128  ;;  %s859_s29 = smov [#allocation6]  }
  0x40   : > { %p756_p2 = scmp.ne.s32.totalorder %s207_s4, %s755_s28  ;;  %s760_s19 = sshll.u32 %s859_s29, 4  ;;  %s761_s19 = int_to_ptr.vmem [resolvable:$false] %s760_s19 }
  0x41   : > { %s762_s21 = scalar_lea.vmem %s761_s19, 256  ;;  %p763_p8 = scmp.lt.s32.totalorder %s207_s4, %s761_s19 }
  0x42   : > { %p758_p9 = pnand %p756_p2, %p712_p5  ;;  %p764_p7 = scmp.lt.s32.totalorder %s762_s21, %s755_s28 }
  0x44   : > { %p759_p11 = pneg %p758_p9  ;;  %p765_p3 = por %p764_p7, %p763_p8 }
  0x46   : > { %p766_p6 = pnand %p765_p3, %p759_p11 }
  0x48   : > { %769 = shalt.err (!%p766_p6)
}
  0x49   : > { %642 = dma.hbm_to_vmem [thread:$0]  (!%p965_p0), %s1010_s22, 128, %s207_s4, %s193_s6  }
  0x4a   : > { %p1139_p13 = scmp.ne.s32.totalorder %s1138_s11, 0 }
  0x4b   : > { %s1037_s23 = sand.u32 (!%p1139_p13), 1, %s840_s13   ;;  %p1140_p8 = scmp.ne.s32.totalorder (!%p1139_p13), %s1132_s24, 0 }
  0x4c   : > { %227 = sbr.rel (%p1139_p13) target bundleno = 520 (0x208), region = 32  ;;  %s1040_s8 = sshll.u32 (!%p1139_p13), %s1037_s23, 3 }
  0x4d   : > { %s230_s10 = scalar_lea.sflag (!%p1139_p13), [#allocation4], %s1037_s23  ;;  %s233_s5 = scalar_lea.vmem (!%p1139_p13), [#allocation3], %s1040_s8 }
  0x53   : > { %823 = dma.done.wait (%p1140_p8), %s230_s10, 128  }
  0x54   : > { %825 = vsyncadd (%p1140_p8), %s230_s10, 4294967168  ;;  %s239_s9 = scalar_lea.sflag [#allocation7], %s1037_s23  ;;  %s242_s11 = scalar_lea.vmem [#allocation6], %s1040_s8 }
  0x55   : > { %827 = dma.done.wait (%p1140_p8), %s239_s9, 128  }
  0x56   : > { %829 = vsyncadd (%p1140_p8), %s239_s9, 4294967168  ;;  %vm300_vm0 = vcmask 1043456   ;;  %v295_v0 = vld [vmem:[%s233_s5] sm:$0xff]  ;;  %v296_v1 = vld [vmem:[%s242_s11] sm:$0xff]  ;;  %p281_p0 = scmp.lt.s32.totalorder %s848_s15, 1  ;;  %vm434_vm2 = vcmask 1040384  }
  0x57   : > { %v298_v2 = vcombine.high %v295_v0, %v295_v0  ;;  %v301_v3 = vsel %vm300_vm0, %v295_v0, -inf  ;;  %v323_v4 = vcombine.high %v296_v1, %v296_v1  ;;  %v325_v5 = vsel %vm300_vm0, %v296_v1, -inf  ;;  %s277_s18 = scalar_lea.vmem [#allocation8], %s1040_s8  ;;  %s623_s29 = sshll.u32 %s848_s15, 7 }
  0x58   : > { %v302_v6 = vrot.slane %v301_v3, 4  ;;  %v326_v7 = vrot.slane %v325_v5, 4  ;;  %s282_s24 = scalar_select %p281_p0, %s848_s15, 1  ;;  %vm293_vm3 = vcmask 0  }
  0x59   : > { %v308_v8 = vsel %vm300_vm0, %v298_v2, -inf  ;;  %v332_v9 = vsel %vm300_vm0, %v323_v4, -inf  ;;  %s480_s28 = sshll.u32 %s277_s18, 4  ;;  %s1078_s10 = scalar_lea.hbm %s1128_s3, %s623_s29  ;;  %s1073_s28 = int_to_ptr.vmem [resolvable:$true] %s480_s28 }
  0x5a   : > { %v303_v10 = vmax.f32 %v301_v3, %v302_v6  ;;  %v309_v11 = vrot.slane %v308_v8, 4  ;;  %v327_v12 = vmax.f32 %v325_v5, %v326_v7  ;;  %v333_v13 = vrot.slane %v332_v9, 4  ;;  %s620_s22 = sshll.u32 %s282_s24, 1  ;;  %s466_s5 = scalar_lea.sflag [#allocation5], %s1037_s23 }
  0x5b   : > { %s287_s30 = scalar_lea.vmem %s1127_s2, %s620_s22  ;;  %s770_s9 = scalar_lea.vmem %s1073_s28, 128 }
  0x5c   : > { %v304_v14 = vrot.slane %v303_v10, 2  ;;  %v310_v15 = vmax.f32 %v308_v8, %v309_v11  ;;  %v328_v16 = vrot.slane %v327_v12, 2  ;;  %v334_v17 = vmax.f32 %v332_v9, %v333_v13  ;;  %p771_p5 = scmp.ne.s32.totalorder %s1073_s28, %s770_s9  ;;  %p1141_p7 = scmp.ne.s32.totalorder %s1133_s25, 0 }
  0x5d   : > { %s862_s8 = smov [#allocation8]  }
  0x5e   : > { %v305_v18 = vmax.f32 %v303_v10, %v304_v14  ;;  %v311_v19 = vrot.slane %v310_v15, 2  ;;  %v329_v20 = vmax.f32 %v327_v12, %v328_v16  ;;  %v335_v21 = vrot.slane %v334_v17, 2  ;;  %p772_p4 = pnand %p771_p5, %p1141_p7  ;;  %s774_s15 = sshll.u32 %s862_s8, 4  ;;  %s775_s15 = int_to_ptr.vmem [resolvable:$false] %s774_s15 }
  0x5f   : > { %s776_s11 = scalar_lea.vmem %s775_s15, 256  ;;  %p777_p12 = scmp.lt.s32.totalorder %s1073_s28, %s775_s15 }
  0x60   : > { %v306_v22 = vrot.slane %v305_v18, 1  ;;  %v312_v23 = vmax.f32 %v310_v15, %v311_v19  ;;  %v330_v24 = vrot.slane %v329_v20, 1  ;;  %v336_v25 = vmax.f32 %v334_v17, %v335_v21  ;;  %p773_p10 = pneg %p772_p4  ;;  %p778_p1 = scmp.lt.s32.totalorder %s776_s11, %s770_s9 }
  0x62   : > { %v307_v26 = vmax.f32 %v305_v18, %v306_v22  ;;  %v313_v27 = vrot.slane %v312_v23, 1  ;;  %v331_v28 = vmax.f32 %v329_v20, %v330_v24  ;;  %v337_v29 = vrot.slane %v336_v25, 1  ;;  %p779_p2 = por %p778_p1, %p777_p12 }
  0x64   : > { %v314_v30 = vmax.f32 %v312_v23, %v313_v27  ;;  %v338_v31 = vmax.f32 %v336_v25, %v337_v29  ;;  %v424_v25 = vlaneseq  ;;  %v406_v27 = vld [vmem:[%s287_s30] sm:$0x3]  ;;  %p780_p9 = pnand %p779_p2, %p773_p10 }
  0x66   : > { %v317_v32 = vcombine.low %v307_v26, %v314_v30  ;;  %v341_v33 = vcombine.low %v331_v28, %v338_v31  ;;  %v407_v31 = vunpack.c.0.s8 %v406_v27 }
  0x68   : > { %v319_v34 = vsub.f32 %v295_v0, %v317_v32  ;;  %v343_v35 = vsub.f32 %v296_v1, %v341_v33  ;;  %v425_v32 = vshrl.u32 %v424_v25, 7  ;;  %vm408_vm1 = vcmp.eq.s32.totalorder %v407_v31, 0 }
  0x6a   : > { %v320_v36 = vmul.f32 1.442695, %v319_v34  ;;  %v344_v37 = vmul.f32 1.442695, %v343_v35 }
  0x6c   : > { %702 = vpow2.f32 %v320_v36 }
  0x6d   : > { %704 = vpow2.f32 %v344_v37 }
  0x76   : > { %v703_v38 = vpop.eup %702 }
  0x77   : > { %v705_v39 = vpop.eup %704  ;;  %v364_v40 = vmul.f32 %v703_v38, %v703_v38 }
  0x78   : > { %v346_v41 = vmul.f32 %v705_v39, %v703_v38  ;;  %v382_v42 = vmul.f32 %v705_v39, %v705_v39  ;;  %v426_v38 = vsub.s32 0, %v425_v32  ;;  %v430_v39 = vsub.s32 4, %v425_v32 }
  0x79   : > { %v366_v43 = vcombine.high %v364_v40, %v364_v40  ;;  %v368_v44 = vsel %vm300_vm0, %v364_v40, 0.0 }
  0x7a   : > { %v348_v45 = vcombine.high %v346_v41, %v346_v41  ;;  %v350_v46 = vsel %vm300_vm0, %v346_v41, 0.0  ;;  %v369_v47 = vrot.slane %v368_v44, 4  ;;  %v384_v48 = vcombine.high %v382_v42, %v382_v42 }
  0x7b   : > { %v375_v49 = vsel %vm300_vm0, %v366_v43, 0.0  ;;  %v386_v50 = vsel %vm300_vm0, %v382_v42, 0.0  ;;  %v351_v55 = vrot.slane %v350_v46, 4 }
  0x7c   : > { %v357_v51 = vsel %vm300_vm0, %v348_v45, 0.0  ;;  %v370_v52 = vadd.f32 %v369_v47, %v368_v44  ;;  %v376_v53 = vrot.slane %v375_v49, 4  ;;  %v387_v54 = vrot.slane %v386_v50, 4 }
  0x7d   : > { %v393_v56 = vsel %vm300_vm0, %v384_v48, 0.0  ;;  %v358_v61 = vrot.slane %v357_v51, 4  ;;  %v352_v2 = vadd.f32 %v351_v55, %v350_v46  ;;  %v860_v48 = vmov 0.0  }
  0x7e   : > { %v371_v57 = vrot.slane %v370_v52, 2  ;;  %v377_v58 = vadd.f32 %v376_v53, %v375_v49  ;;  %v388_v59 = vadd.f32 %v387_v54, %v386_v50  ;;  %v394_v60 = vrot.slane %v393_v56, 4  ;;  %294 = vst.msk [vmem:[#allocation2] sm:$0x1] %vm293_vm3, %v860_v48 }
  0x7f   : > { %v359_v7 = vadd.f32 %v358_v61, %v357_v51  ;;  %v353_v12 = vrot.slane %v352_v2, 2  ;;  %v861_v49 = vmov 0  }
  0x80   : > { %v372_v62 = vadd.f32 %v371_v57, %v370_v52  ;;  %v378_v63 = vrot.slane %v377_v58, 2  ;;  %v389_v0 = vrot.slane %v388_v59, 2  ;;  %v395_v1 = vadd.f32 %v394_v60, %v393_v56  ;;  %699 = vset.pattern.permute.xlu0 %v861_v49 }
  0x81   : > { %v360_v16 = vrot.slane %v359_v7, 2  ;;  %v354_v19 = vadd.f32 %v353_v12, %v352_v2 }
  0x82   : > { %v373_v3 = vrot.slane %v372_v62, 1  ;;  %v379_v4 = vadd.f32 %v378_v63, %v377_v58  ;;  %v390_v5 = vadd.f32 %v389_v0, %v388_v59  ;;  %v396_v6 = vrot.slane %v395_v1, 2 }
  0x83   : > { %v361_v21 = vadd.f32 %v360_v16, %v359_v7  ;;  %v355_v22 = vrot.slane %v354_v19, 1 }
  0x84   : > { %v374_v8 = vadd.f32 %v373_v3, %v372_v62  ;;  %v380_v9 = vrot.slane %v379_v4, 1  ;;  %v391_v10 = vrot.slane %v390_v5, 1  ;;  %v397_v11 = vadd.f32 %v396_v6, %v395_v1 }
  0x85   : > { %v362_v23 = vrot.slane %v361_v21, 1  ;;  %v356_v24 = vadd.f32 %v355_v22, %v354_v19  ;;  %v422_v57 = vld [vmem:[#allocation2] sm:$0x1] }
  0x86   : > { %v381_v13 = vadd.f32 %v380_v9, %v379_v4  ;;  %v392_v14 = vadd.f32 %v391_v10, %v390_v5  ;;  %v398_v15 = vrot.slane %v397_v11, 1 }
  0x87   : > { %v363_v26 = vadd.f32 %v362_v23, %v361_v21 }
  0x88   : > { %v399_v17 = vadd.f32 %v398_v15, %v397_v11  ;;  %v400_v18 = vmul.f32 %v392_v14, %v374_v8 }
  0x8a   : > { %v401_v20 = vmul.f32 %v399_v17, %v381_v13  ;;  %706 = vrsqrt.f32 %v400_v18 }
  0x8c   : > { %708 = vrsqrt.f32 %v401_v20 }
  0x94   : > { %v707_v28 = vpop.eup %706 }
  0x95   : > { %v404_v29 = vmul.f32 %v707_v28, %v356_v24 }
  0x96   : > { %v709_v30 = vpop.eup %708 }
  0x97   : > { %v405_v33 = vmul.f32 %v709_v30, %v363_v26  ;;  %v409_v34 = vsub.f32 1.0, %v404_v29  ;;  %v411_v35 = vmax.f32 %v404_v29, 0.0 }
  0x99   : > { %v410_v36 = vsub.f32 1.0, %v405_v33  ;;  %v412_v37 = vmax.f32 %v405_v33, 0.0 }
  0x9b   : > { %v415_v40 = vcombine.low %v409_v34, %v410_v36  ;;  %v419_v41 = vcombine.low %v411_v35, %v412_v37 }
  0x9d   : > { %v421_v42 = vsel %vm408_vm1, %v415_v40, %v419_v41 }
  0x9e   : > { %v427_v43 = vrot.slane %v421_v42, %v426_v38  ;;  %v431_v44 = vrot.slane %v421_v42, %v430_v39 }
  0xa0   : > { %v435_v45 = vsel %vm434_vm2, %v427_v43, 0.0  ;;  %v436_v46 = vsel %vm434_vm2, %v431_v44, 0.0 }
  0xa1   : > { %v437_v47 = vadd.f32 %v436_v46, %v435_v45 }
  0xa3   : > { %438 = vadd.xlane.f32.xlu0 %v437_v47 }
 0x130   : > { %v439_v50 = vpop.xlane.xlu0 %438 }
 0x131   : > { %v440_v51 = vrot.slane %v439_v50, 4 }
 0x133   : > { %v441_v52 = vadd.f32 %v440_v51, %v439_v50 }
 0x135   : > { %v442_v53 = vrot.slane %v441_v52, 2 }
 0x137   : > { %v443_v54 = vadd.f32 %v442_v53, %v441_v52 }
 0x139   : > { %v444_v55 = vrot.slane %v443_v54, 1 }
 0x13b   : > { %v445_v56 = vadd.f32 %v444_v55, %v443_v54 }
 0x13d   : > { %628 = vpush %v445_v56 }
 0x16e   : > { %s629_s7 = spop %628 }
 0x16f   : > { %v447_v58 = vstv %s629_s7 }
 0x170   : > { %v448_v59 = vadd.f32 %v447_v58, %v422_v57 }
 0x172   : > { %450 = vst.msk [vmem:[#allocation2] sm:$0x1] %vm293_vm3, %v448_v59 }
 0x179   : > { %v621_v60 = vld [vmem:[#allocation2] ss:$0 sm:$0xff] }
 0x17a   : > { %461 = vperm.xlu0 %699, %v621_v60  }
 0x1f9   : > { %v462_v61 = vpop.permute.xlu0 %461 }
 0x1fa   : > { %464 = vst [vmem:[%s277_s18] sm:$0xff] %v462_v61 }
 0x1fb   : > { %783 = shalt.err (!%p780_p9)
}
 0x1fc   : > { %s784_s23 = scalar_lea.hbm %s1078_s10, 128  ;;  %s788_s4 = scalar_lea.hbm %s1128_s3, 256 }
 0x1fd   : > { %p785_p11 = scmp.ne.s32.totalorder %s1078_s10, %s784_s23  ;;  %p789_p13 = scmp.lt.u32.totalorder %s1078_s10, %s1128_s3 }
 0x1fe   : > { %p790_p8 = scmp.lt.u32.totalorder %s788_s4, %s784_s23  ;;  %p792_p5 = scmp.lt.u32.totalorder %s784_s23, %s1078_s10 }
 0x1ff   : > { %p786_p3 = pnand %p785_p11, %p1141_p7 }
 0x200   : > { %p791_p0 = por %p790_p8, %p789_p13 }
 0x201   : > { %p787_p6 = pneg %p786_p3 }
 0x202   : > { %p793_p4 = por %p792_p5, %p791_p0 }
 0x204   : > { %p794_p10 = pnand %p793_p4, %p787_p6 }
 0x206   : > { %797 = shalt.err (!%p794_p10)
}
 0x207   : > { %634 = dma.vmem_to_hbm [thread:$0]  (%p1141_p7), %s1073_s28, 128, %s1078_s10, %s466_s5  }
 0x208 PF: > { %s492_s7 = sand.u32 1, %s836_s12   ;;  %p1142_p12 = scmp.ne.s32.totalorder %s1134_s27, 0 }
 0x209   : > { %p1143_p1 = scmp.ge.s32.totalorder %s856_s17, 2  ;;  %s493_s18 = scalar_lea.sflag [#allocation5], %s492_s7 }
 0x20b   : > { %p644_p2 = pnand %p1143_p1, %p1142_p12 }
 0x20d   : > { %831 = dma.done.wait (!%p644_p2), %s493_s18, 128  }
 0x20e   : > { %833 = vsyncadd (!%p644_p2), %s493_s18, 4294967168  ;;  %s22_s17 = sadd.s32 1, %s856_s17   ;;  %s1144_s12 = smov %s840_s13 }
 0x20f   : > { %p19_p9 = scmp.ge.s32.totalorder %s22_s17, 4   ;;  %s1145_s13 = smov %s844_s14 }
 0x210   : > { %s1146_s14 = smov %s939_s26  ;;  %s1147_s15 = smov %s852_s16 }
 0x211   : > { %s1148_s16 = smov %s1150_s20  ;;  %21 = sbr.rel (!%p19_p9) target bundleno = 8 (0x8), region = 101 }
 0x218   :  { %498 = vsyncpa [#allocation4], 1 }
 0x219   :  { %500 = vsyncpa [#allocation4 + $0x1], 1 }
 0x21a   :  { %501 = vsyncpa [#allocation7], 1 }
 0x21b   :  { %503 = vsyncpa [#allocation7 + $0x1], 1 }
 0x21c   :  { %504 = vsyncpa [#allocation5], 1 }
 0x21d   :  { %506 = vsyncpa [#allocation5 + $0x1], 1 }

</bundles_post_ra>
